<compile_context>
chip_gen: v7x
topology: tpu7x:2x2x1
jax: 0.10.0
libtpu: 0.0.40
codegen_flags: <defaults>
</compile_context>

<pallas_src>
import math
from functools import partial

import jax
import jax.numpy as jnp
from jax.experimental import pallas as pl
from jax.experimental.pallas import tpu as pltpu


# ----------------------------------------------------------------------------
# Pallas kernel: single-shot (full-K) matmul with fused bias + optional leaky_relu
# ----------------------------------------------------------------------------
def _mm_kernel(x_ref, w_ref, b_ref, o_ref, *, lrelu, slope):
    acc = jnp.dot(x_ref[...], w_ref[...], preferred_element_type=jnp.float32)
    acc = acc + b_ref[...]
    if lrelu:
        acc = jnp.where(acc >= 0.0, acc, slope * acc)
    o_ref[...] = acc.astype(o_ref.dtype)


def _rup(x, m):
    return ((x + m - 1) // m) * m


def pallas_matmul(x, w, b, *, lrelu=False, slope=0.1, out_dtype=jnp.float32, tm=512):
    """out = act(x @ w + b).  x:(M,K), w:(K,N), b:(N,).  Operands fed to the MXU in bf16,
    accumulated in f32.  K is contracted in a single block, so there is no K grid axis.
    M tiles that don't divide M are handled by Pallas partial blocks (matmul rows are
    independent, so the unspecified row padding never reaches valid outputs)."""
    M, K = x.shape
    K2, N = w.shape
    assert K == K2
    b2 = b.reshape(1, N).astype(jnp.float32)

    tm_eff = min(tm, _rup(M, 8))
    if N <= 256:
        tn_eff = N                      # full-dim block (allowed even if not a lane multiple)
    elif N % 256 == 0:
        tn_eff = 256                    # matches the 256-wide MXU on v6e/v7x
    else:
        assert N % 128 == 0, "wide N must be a multiple of 128"
        tn_eff = 128

    grid = (pl.cdiv(M, tm_eff), pl.cdiv(N, tn_eff))
    kernel = partial(_mm_kernel, lrelu=lrelu, slope=slope)

    return pl.pallas_call(
        kernel,
        out_shape=jax.ShapeDtypeStruct((M, N), out_dtype),
        grid=grid,
        in_specs=[
            pl.BlockSpec((tm_eff, K), lambda i, j: (i, 0)),
            pl.BlockSpec((K, tn_eff), lambda i, j: (0, j)),
            pl.BlockSpec((1, tn_eff), lambda i, j: (0, j)),
        ],
        out_specs=pl.BlockSpec((tm_eff, tn_eff), lambda i, j: (i, j)),
        compiler_params=pltpu.CompilerParams(
            dimension_semantics=("parallel", "parallel"),
            vmem_limit_bytes=48 * 1024 * 1024,   # tiles use only a few MiB; safe on v7x 64 MiB VMEM
        ),
    )(x.astype(jnp.bfloat16), w.astype(jnp.bfloat16), b2)


# ----------------------------------------------------------------------------
# Conv2d (PyTorch semantics) in NHWC via im2col + Pallas matmul
# ----------------------------------------------------------------------------
def _im2col_nhwc(x, kh, kw, stride, pad):
    """x: (B,H,W,C) -> patches (B,Hout,Wout,kh*kw*C) with K ordered (kh, kw, C)."""
    B, H, W, C = x.shape
    sh, sw = stride
    ph, pw = pad
    Hout = (H + 2 * ph - kh) // sh + 1
    Wout = (W + 2 * pw - kw) // sw + 1
    xp = jnp.pad(x, ((0, 0), (ph, ph), (pw, pw), (0, 0)))
    hi = (jnp.arange(Hout) * sh)[:, None] + jnp.arange(kh)[None, :]          # (Hout, kh)
    wi = (jnp.arange(Wout) * sw)[:, None] + jnp.arange(kw)[None, :]          # (Wout, kw)
    patches = xp[:, hi[:, None, :, None], wi[None, :, None, :], :]           # (B,Hout,Wout,kh,kw,C)
    return patches.reshape(B, Hout, Wout, kh * kw * C), Hout, Wout


def conv2d_nhwc(x, layer, *, lrelu=True):
    """x: (B,H,W,Cin) bf16 -> (B,Hout,Wout,Cout) bf16, leaky_relu fused in the kernel."""
    kh, kw = layer["ksize"]
    patches, Hout, Wout = _im2col_nhwc(x, kh, kw, layer["stride"], layer["pad"])
    B = x.shape[0]
    M = B * Hout * Wout
    K = patches.shape[-1]
    out = pallas_matmul(patches.reshape(M, K), layer["w"], layer["b"],
                        lrelu=lrelu, out_dtype=jnp.bfloat16)
    return out.reshape(B, Hout, Wout, -1)


def conv2d_post_xla(x, layer):
    """Cout=1 post conv: done in XLA (a 1-lane Pallas output store would be 99% masked)."""
    kh, kw = layer["ksize"]
    patches, _, _ = _im2col_nhwc(x, kh, kw, layer["stride"], layer["pad"])
    out = jnp.dot(patches, layer["w"], preferred_element_type=jnp.float32) + layer["b"]
    return out                                                              # (B,H,W,1) f32


# ----------------------------------------------------------------------------
# DiscriminatorB (single window length)
# ----------------------------------------------------------------------------
BAND_FRACS = ((0.0, 0.1), (0.1, 0.25), (0.25, 0.5), (0.5, 0.75), (0.75, 1.0))


def _init_conv(key, cin, cout, ksize):
    kh, kw = ksize
    k1, k2 = jax.random.split(key)
    fan_in = cin * kh * kw
    bound = 1.0 / math.sqrt(fan_in)
    w = jax.random.uniform(k1, (cout, cin, kh, kw), minval=-bound, maxval=bound,
                           dtype=jnp.float32)
    b = jax.random.uniform(k2, (cout,), minval=-bound, maxval=bound, dtype=jnp.float32)
    # Flatten + cast ONCE at init, matching im2col K order (kh, kw, cin).
    w_flat = w.transpose(2, 3, 1, 0).reshape(kh * kw * cin, cout).astype(jnp.bfloat16)
    return dict(w=w_flat, b=b, ksize=ksize)


def init_disc_b_params(key, window_length, channels=32, hop_factor=0.25):
    n_freq = window_length // 2 + 1
    hop = int(window_length * hop_factor)
    bands = tuple((int(b0 * n_freq), int(b1 * n_freq)) for (b0, b1) in BAND_FRACS)

    layer_defs = [
        (2, channels, (3, 9), (1, 1), (1, 4)),
        (channels, channels, (3, 9), (1, 2), (1, 4)),
        (channels, channels, (3, 9), (1, 2), (1, 4)),
        (channels, channels, (3, 9), (1, 2), (1, 4)),
        (channels, channels, (3, 3), (1, 1), (1, 1)),
    ]

    band_convs = []
    for _ in bands:
        layers = []
        for (cin, cout, ksz, strd, pad) in layer_defs:
            key, sub = jax.random.split(key)
            lyr = _init_conv(sub, cin, cout, ksz)
            lyr.update(stride=strd, pad=pad)
            layers.append(lyr)
        band_convs.append(layers)

    key, sub = jax.random.split(key)
    post = _init_conv(sub, channels, 1, (3, 3))
    post.update(stride=(1, 1), pad=(1, 1))

    # Cached STFT constants (built once, stored bf16): periodic Hann window and a
    # lane-padded DFT matrix with interleaved (re, im) columns, so the matmul output
    # reshapes straight to NHWC (B, frames, freq, 2).  Padded freq bins (>= n_freq)
    # are never read downstream (band slices stop at n_freq), so no output slicing.
    n = jnp.arange(window_length, dtype=jnp.float32)
    window = 0.5 - 0.5 * jnp.cos(2.0 * jnp.pi * n / window_length)
    freq_pad = _rup(n_freq, 128)
    k = jnp.arange(freq_pad, dtype=jnp.float32)
    ang = -2.0 * jnp.pi * n[:, None] * k[None, :] / window_length            # (n_fft, freq_pad)
    dft = jnp.stack([jnp.cos(ang), jnp.sin(ang)], axis=-1).reshape(window_length, 2 * freq_pad)

    return dict(
        window_length=window_length, hop=hop, n_freq=n_freq, freq_pad=freq_pad,
        bands=bands, band_convs=band_convs, post=post,
        window=window, dft=dft.astype(jnp.bfloat16),
        dft_bias=jnp.zeros((2 * freq_pad,), jnp.float32),
    )


def _spectrogram_nhwc(params, x):
    """x: (B, T) normalized audio -> (B, n_frames, freq_pad, 2) bf16
    (one-sided STFT, periodic Hann, center=True reflect padding, power=None)."""
    B, T = x.shape
    wl, hop = params["window_length"], params["hop"]
    pad = wl // 2
    # NOTE: reflect padding requires T >= window_length // 2 + 1 (same as torch.stft).
    xp = jnp.pad(x, ((0, 0), (pad, pad)), mode="reflect")
    n_frames = (xp.shape[-1] - wl) // hop + 1
    idx = (jnp.arange(n_frames) * hop)[:, None] + jnp.arange(wl)[None, :]
    frames = xp[:, idx] * params["window"]                                   # (B, n_frames, wl) f32
    frames = frames.reshape(B * n_frames, wl).astype(jnp.bfloat16)
    spec = pallas_matmul(frames, params["dft"], params["dft_bias"],
                         lrelu=False, out_dtype=jnp.bfloat16)                # (B*frames, 2*freq_pad)
    return spec.reshape(B, n_frames, params["freq_pad"], 2)


def disc_b_forward(params, x):
    """x: (B, 1, T) -> (logits (B,1,H,W) f32, fmap list of NCHW f32), matching
    DiscriminatorB.forward (internally NHWC/bf16; converted at the outputs)."""
    x = x[:, 0, :]                                                           # squeeze(1)
    x = x - jnp.mean(x, axis=-1, keepdims=True)
    x = 0.8 * x / (jnp.max(jnp.abs(x), axis=-1, keepdims=True) + 1e-9)

    spec = _spectrogram_nhwc(params, x)                                      # (B, H, Fpad, 2)

    fmap, outs = [], []
    for (b0, b1), layers in zip(params["bands"], params["band_convs"]):
        band = spec[:, :, b0:b1, :]                                          # NHWC, C=2
        for i, lyr in enumerate(layers):
            band = conv2d_nhwc(band, lyr, lrelu=True)
            if i > 0:
                fmap.append(band.transpose(0, 3, 1, 2).astype(jnp.float32))  # -> NCHW f32
        outs.append(band)

    xcat = jnp.concatenate(outs, axis=2)                                     # concat along freq (W)
    xout = conv2d_post_xla(xcat, params["post"])                             # (B, H, Wtot, 1) f32
    xout = xout.transpose(0, 3, 1, 2)                                        # (B, 1, H, Wtot)
    fmap.append(xout)
    return xout, fmap


# ----------------------------------------------------------------------------
# MultiBandDiscriminator
# ----------------------------------------------------------------------------
class MultiBandDiscriminator:
    def __init__(self, h, key):
        self.fft_sizes = h.get("mbd_fft_sizes", [2048, 1024, 512])
        self.params = []
        self._fwds = []
        for wl in self.fft_sizes:
            key, sub = jax.random.split(key)
            p = init_disc_b_params(sub, wl)
            self.params.append(p)
            # Arrays are closed over as constants; ints/tuples stay static Python config.
            self._fwds.append(jax.jit(partial(disc_b_forward, p)))

    def __call__(self, y, y_hat):
        B = y.shape[0]
        x = jnp.concatenate([y, y_hat], axis=0)      # share every matmul between y and y_hat
        y_d_rs, y_d_gs, fmap_rs, fmap_gs = [], [], [], []
        for fwd in self._fwds:
            logits, fmap = fwd(x)
            y_d_rs.append(logits[:B])
            y_d_gs.append(logits[B:])
            fmap_rs.append([f[:B] for f in fmap])
            fmap_gs.append([f[B:] for f in fmap])
        return y_d_rs, y_d_gs, fmap_rs, fmap_gs


# ----------------------------------------------------------------------------
if __name__ == "__main__":
    key = jax.random.PRNGKey(0)
    k_param, k_y, k_yh, k_chk = jax.random.split(key, 4)

    # Sanity-check the fused Pallas matmul on an MXU-unaligned shape (K=54, N=32) vs XLA.
    xc = jax.random.normal(k_chk, (68, 54), dtype=jnp.float32).astype(jnp.bfloat16)
    wc = jax.random.normal(jax.random.fold_in(k_chk, 1), (54, 32),
                           dtype=jnp.float32).astype(jnp.bfloat16) * 0.1
    bc = jax.random.normal(jax.random.fold_in(k_chk, 2), (32,), dtype=jnp.float32)
    got = pallas_matmul(xc, wc, bc, lrelu=True, out_dtype=jnp.float32)
    ref = jnp.dot(xc.astype(jnp.float32), wc.astype(jnp.float32)) + bc
    ref = jnp.where(ref >= 0.0, ref, 0.1 * ref)
    assert jnp.allclose(got, ref, atol=2e-2, rtol=2e-2), float(jnp.max(jnp.abs(got - ref)))

    # Small shapes: two STFT window sizes, batch=2, mono audio of length 256.
    h = {"mbd_fft_sizes": [128, 64]}
    B, T = 2, 256
    y = jax.random.normal(k_y, (B, 1, T), dtype=jnp.float32)
    y_hat = jax.random.normal(k_yh, (B, 1, T), dtype=jnp.float32)

    mbd = MultiBandDiscriminator(h, k_param)
    out = mbd(y, y_hat)
    jax.block_until_ready(out)
    print("KERNEL_OK")
</pallas_src>

<mosaic_0001>
module attributes {stable_mosaic.version = 11 : i64} {
  func.func @_mm_kernel(%arg0: i32, %arg1: i32, %arg2: memref<72x54xbf16, #tpu.memory_space<vmem>>, %arg3: memref<54x32xbf16, #tpu.memory_space<vmem>>, %arg4: memref<1x32xf32, #tpu.memory_space<vmem>>, %arg5: memref<72x32xf32, #tpu.memory_space<vmem>>) attributes {dimension_semantics = [#tpu.dimension_semantics<parallel>, #tpu.dimension_semantics<parallel>], iteration_bounds = array<i64: 1, 1>, scalar_prefetch = 0 : i64, scratch_operands = 0 : i64, tpu.core_type = #tpu.core_type<tc>, window_params = [{transform_indices = @transform_0, window_bounds = array<i64: 72, 54>}, {transform_indices = @transform_1, window_bounds = array<i64: 54, 32>}, {transform_indices = @transform_2, window_bounds = array<i64: 1, 32>}, {transform_indices = @transform_3, window_bounds = array<i64: 72, 32>}]} {
    %c0 = arith.constant 0 : index
    %c0_0 = arith.constant 0 : index
    %0 = vector.load %arg2[%c0, %c0_0] : memref<72x54xbf16, #tpu.memory_space<vmem>>, vector<72x54xbf16>
    %c0_1 = arith.constant 0 : index
    %c0_2 = arith.constant 0 : index
    %1 = vector.load %arg3[%c0_1, %c0_2] : memref<54x32xbf16, #tpu.memory_space<vmem>>, vector<54x32xbf16>
    %cst = arith.constant dense<0.000000e+00> : vector<72x32xf32>
    %2 = tpu.matmul %0, %1, %cst {dimension_numbers = #tpu.dot_dimension_numbers<[1], [0], [0], [1], [0, 0, 1, 1], [], []>} : vector<72x54xbf16>, vector<54x32xbf16>, vector<72x32xf32> -> vector<72x32xf32>
    %c0_3 = arith.constant 0 : index
    %c0_4 = arith.constant 0 : index
    %3 = vector.load %arg4[%c0_3, %c0_4] : memref<1x32xf32, #tpu.memory_space<vmem>>, vector<1x32xf32>
    %4 = vector.broadcast %3 : vector<1x32xf32> to vector<72x32xf32>
    %5 = arith.addf %2, %4 : vector<72x32xf32>
    %cst_5 = arith.constant 0.000000e+00 : f32
    %6 = vector.broadcast %cst_5 : f32 to vector<72x32xf32>
    %7 = arith.cmpf oge, %5, %6 : vector<72x32xf32>
    %cst_6 = arith.constant 1.000000e-01 : f32
    %8 = vector.broadcast %cst_6 : f32 to vector<72x32xf32>
    %9 = arith.mulf %8, %5 : vector<72x32xf32>
    %10 = arith.select %7, %5, %9 : vector<72x32xi1>, vector<72x32xf32>
    %c0_7 = arith.constant 0 : index
    %c0_8 = arith.constant 0 : index
    %11 = vector.load %arg5[%c0_7, %c0_8] : memref<72x32xf32, #tpu.memory_space<vmem>>, vector<72x32xf32>
    tpu.vector_store %arg5[%c0_7, %c0_8], %10 {strides = array<i32>} : memref<72x32xf32, #tpu.memory_space<vmem>>, vector<72x32xf32>,
    return
  }
  func.func @transform_0(%arg0: i32, %arg1: i32) -> (i32, i32) {
    %c0_i32 = arith.constant 0 : i32
    %c0_i32_0 = arith.constant 0 : i32
    return %arg0, %c0_i32 : i32, i32
  }
  func.func @transform_1(%arg0: i32, %arg1: i32) -> (i32, i32) {
    %c0_i32 = arith.constant 0 : i32
    %c0_i32_0 = arith.constant 0 : i32
    return %c0_i32, %arg1 : i32, i32
  }
  func.func @transform_2(%arg0: i32, %arg1: i32) -> (i32, i32) {
    %c0_i32 = arith.constant 0 : i32
    %c0_i32_0 = arith.constant 0 : i32
    return %c0_i32, %arg1 : i32, i32
  }
  func.func @transform_3(%arg0: i32, %arg1: i32) -> (i32, i32) {
    %c0_i32 = arith.constant 0 : i32
    return %arg0, %arg1 : i32, i32
  }
}

</mosaic_0001>

<bundles_post_ra>
// kernel: tpu_custom_call.1
= control target key start
LH: loop header
LB: loop body
LE: loop exit
PB: predicated region body
PF: predicated region fallthrough
CT: control target
= control target key end

     0   :  { %v286_v0 = vmov 0.0   ;;  %vm287_vm0 = vmmov 0   ;;  %vm98_vm1 = vcmask 1042432   ;;  %vm82_vm2 = vcmask 441344   ;;  %s379_s1 = inlined_call_operand.vmem [shape: bf16[54,32], index: 1, kind: input, shape index: {}]   ;;  %s380_s0 = inlined_call_operand.vmem [shape: bf16[68,54], index: 0, kind: input, shape index: {}]   ;;  %s381_s2 = inlined_call_operand.vmem [shape: f32[1,32], index: 2, kind: input, shape index: {}]   ;;  %s382_s3 = inlined_call_operand.vmem [shape: f32[68,32], index: 3, kind: output, shape index: {}]  }
   0x1   :  { %239 = vmatprep.subr.bf16.mxu0 %v286_v0  ;;  %v277_v1 = vld [vmem:[%s379_s1] sm:$0xff]   ;;  %267 = vmatprep.subr.bf16.mxu1 %v286_v0  ;;  %v278_v2 = vld [vmem:[%s379_s1 + $0x8] sm:$0xff]   ;;  %v280_v3 = vld [vmem:[%s379_s1 + $0x18] ss:$0 sps:$4 sm:$0x77]   ;;  %vm201_vm3 = vcmask 261120  }
   0x2   :  { %247 = vmatprep.mubr.msk.bf16.mxu0 %vm287_vm0, %v286_v0  ;;  %259 = vmatprep.mubr.msk.bf16.mxu1 %vm287_vm0, %v286_v0  ;;  %v279_v4 = vld [vmem:[%s379_s1 + $0x10] sm:$0xff]   ;;  %v100_v5 = vsel %vm98_vm1, %v280_v3, 0  ;;  %v281_v6 = vld [vmem:[%s380_s0] sm:$0xff]   ;;  %v282_v7 = vld [vmem:[%s380_s0 + $0x18] sm:$0xff]  }
   0x3   :  { %240 = vmatpush3.bf16.msra.mxu0 %v277_v1  ;;  %271 = vmatpush3.bf16.msra.mxu1 %v277_v1  ;;  %v283_v8 = vld [vmem:[%s380_s0 + $0x8] sm:$0xff]   ;;  %v284_v9 = vld [vmem:[%s380_s0 + $0x20] ss:$0 sps:$4 sm:$0xff]   ;;  %v285_v10 = vld [vmem:[%s380_s0 + $0x10] sm:$0xff]  }
   0x4   :  { %241 = vmatprep.subr.bf16.mxu0 %v286_v0  ;;  %268 = vmatprep.subr.bf16.mxu1 %v286_v0  ;;  %v215_v11 = vld [vmem:[%s381_s2] ss:$0 sm:$0xff] }
   0x7   :  { %242 = vmatpush3.bf16.msra.mxu0 %v278_v2  ;;  %272 = vmatpush3.bf16.msra.mxu1 %v278_v2 }
   0x8   :  { %243 = vmatprep.subr.bf16.mxu0 %v286_v0  ;;  %269 = vmatprep.subr.bf16.mxu1 %v286_v0 }
   0xb   :  { %244 = vmatpush3.bf16.msra.mxu0 %v279_v4  ;;  %273 = vmatpush3.bf16.msra.mxu1 %v279_v4 }
   0xc   :  { %245 = vmatprep.subr.bf16.mxu0 %v286_v0  ;;  %270 = vmatprep.subr.bf16.mxu1 %v286_v0 }
   0xf   :  { %246 = vmatpush3.bf16.msra.mxu0 %v100_v5  ;;  %274 = vmatpush3.bf16.msra.mxu1 %v100_v5 }
  0x12   :  { %248 = vmatmul.mubr.msk.bf16.vlgmr.msra.gmra.mrb[0].mxu0 %vm82_vm2, %v281_v6  ;;  %260 = vmatmul.mubr.msk.bf16.vlgmr.msra.gmra.mrb[0].mxu1 %vm82_vm2, %v282_v7 }
  0x13   :  { %251 = vmatprep.mubr.msk.bf16.mxu0 %vm287_vm0, %v286_v0  ;;  %263 = vmatprep.mubr.msk.bf16.mxu1 %vm287_vm0, %v286_v0 }
  0x1a   :  { %252 = vmatmul.mubr.msk.bf16.gmra.mrb[4].mxu0 %vm82_vm2, %v283_v8  ;;  %264 = vmatmul.mubr.msk.bf16.gmra.mrb[4].mxu1 %vm82_vm2, %v284_v9 }
  0x1b   :  { %255 = vmatprep.mubr.msk.bf16.mxu0 %vm287_vm0, %v286_v0 }
  0x22   :  { %256 = vmatmul.mubr.msk.bf16.gmra.mrb[8].mxu0 %vm82_vm2, %v285_v10 }
  0xe5   :  { %v136_v12 = vpop.f32.mrb[0].mxu0  ;;  %v160_v13 = vpop.f32.mrb[0].mxu1 }
  0xe6   :  { %v137_v14 = vadd.f32 %v215_v11, %v136_v12  ;;  %v249_v15 = vpop.f32.mrb[1].mxu0  ;;  %v161_v16 = vadd.f32 %v215_v11, %v160_v13  ;;  %v261_v17 = vpop.f32.mrb[1].mxu1 }
  0xe7   :  { %v139_v18 = vpop.f32.mrb[2].mxu0  ;;  %v163_v19 = vpop.f32.mrb[2].mxu1 }
  0xe8   :  { %vm174_vm4 = vcmp.ge.f32.partialorder %v137_v14, 0.0  ;;  %v183_v20 = vmul.f32 0.1, %v137_v14  ;;  %v140_v21 = vadd.f32 %v215_v11, %v139_v18  ;;  %v250_v22 = vpop.f32.mrb[3].mxu0  ;;  %vm180_vm5 = vcmp.ge.f32.partialorder %v161_v16, 0.0  ;;  %v262_v23 = vpop.f32.mrb[3].mxu1 }
  0xe9   :  { %v189_v24 = vmul.f32 0.1, %v161_v16  ;;  %v164_v25 = vadd.f32 %v215_v11, %v163_v19 }
  0xea   :  { %v192_v26 = vsel %vm174_vm4, %v137_v14, %v183_v20  ;;  %vm175_vm6 = vcmp.ge.f32.partialorder %v140_v21, 0.0  ;;  %v184_v27 = vmul.f32 0.1, %v140_v21 }
  0xeb   :  { %202 = vst.msk [vmem:[%s382_s3] sm:$0xff] %vm201_vm3, %v192_v26  ;;  %v198_v28 = vsel %vm180_vm5, %v161_v16, %v189_v24  ;;  %vm181_vm7 = vcmp.ge.f32.partialorder %v164_v25, 0.0  ;;  %v190_v29 = vmul.f32 0.1, %v164_v25 }
  0xec   :  { %v193_v30 = vsel %vm175_vm6, %v140_v21, %v184_v27  ;;  %208 = vst.msk [vmem:[%s382_s3 + $0x30] sm:$0xff] %vm201_vm3, %v198_v28 }
  0xed   :  { %203 = vst.msk [vmem:[%s382_s3 + $0x8] sm:$0xff] %vm201_vm3, %v193_v30  ;;  %v144_v31 = vpop.f32.mrb[4].mxu0  ;;  %v199_v32 = vsel %vm181_vm7, %v164_v25, %v190_v29  ;;  %v168_v33 = vpop.f32.mrb[4].mxu1 }
  0xee   :  { %v145_v34 = vadd.f32 %v215_v11, %v144_v31  ;;  %209 = vst.msk [vmem:[%s382_s3 + $0x38] sm:$0xff] %vm201_vm3, %v199_v32  ;;  %v253_v35 = vpop.f32.mrb[5].mxu0  ;;  %v169_v36 = vadd.f32 %v215_v11, %v168_v33  ;;  %v265_v37 = vpop.f32.mrb[5].mxu1 }
  0xef   :  { %v147_v38 = vpop.f32.mrb[6].mxu0  ;;  %v171_v39 = vpop.f32.mrb[6].mxu1 }
  0xf0   :  { %vm176_vm8 = vcmp.ge.f32.partialorder %v145_v34, 0.0  ;;  %v185_v40 = vmul.f32 0.1, %v145_v34  ;;  %v148_v41 = vadd.f32 %v215_v11, %v147_v38  ;;  %v254_v42 = vpop.f32.mrb[7].mxu0  ;;  %vm182_vm9 = vcmp.ge.f32.partialorder %v169_v36, 0.0  ;;  %v266_v43 = vpop.f32.mrb[7].mxu1 }
  0xf1   :  { %v191_v44 = vmul.f32 0.1, %v169_v36 }
  0xf2   :  { %v194_v45 = vsel %vm176_vm8, %v145_v34, %v185_v40  ;;  %vm177_vm10 = vcmp.ge.f32.partialorder %v148_v41, 0.0  ;;  %v186_v46 = vmul.f32 0.1, %v148_v41 }
  0xf3   :  { %204 = vst.msk [vmem:[%s382_s3 + $0x10] sm:$0xff] %vm201_vm3, %v194_v45  ;;  %v200_v47 = vsel %vm182_vm9, %v169_v36, %v191_v44 }
  0xf4   :  { %v195_v48 = vsel %vm177_vm10, %v148_v41, %v186_v46  ;;  %210 = vst.msk [vmem:[%s382_s3 + $0x40] sm:$0xff] %vm201_vm3, %v200_v47 }
  0xf5   :  { %205 = vst.msk [vmem:[%s382_s3 + $0x18] sm:$0xff] %vm201_vm3, %v195_v48  ;;  %v152_v49 = vpop.f32.mrb[8].mxu0 }
  0xf6   :  { %v153_v50 = vadd.f32 %v215_v11, %v152_v49  ;;  %v257_v51 = vpop.f32.mrb[9].mxu0 }
  0xf7   :  { %v155_v52 = vpop.f32.mrb[10].mxu0 }
  0xf8   :  { %vm178_vm11 = vcmp.ge.f32.partialorder %v153_v50, 0.0  ;;  %v187_v53 = vmul.f32 0.1, %v153_v50  ;;  %v156_v54 = vadd.f32 %v215_v11, %v155_v52  ;;  %v258_v55 = vpop.f32.mrb[11].mxu0 }
  0xfa   :  { %v196_v56 = vsel %vm178_vm11, %v153_v50, %v187_v53  ;;  %vm179_vm12 = vcmp.ge.f32.partialorder %v156_v54, 0.0  ;;  %v188_v57 = vmul.f32 0.1, %v156_v54 }
  0xfb   :  { %206 = vst.msk [vmem:[%s382_s3 + $0x20] sm:$0xff] %vm201_vm3, %v196_v56 }
  0xfc   :  { %v197_v58 = vsel %vm179_vm12, %v156_v54, %v188_v57 }
  0xfd   :  { %207 = vst.msk [vmem:[%s382_s3 + $0x28] sm:$0xff] %vm201_vm3, %v197_v58 }

</bundles_post_ra>
